<compile_context>
chip_gen: v5e
topology: v5e:2x2
jax: 0.10.0
libtpu: 0.0.40
codegen_flags: <defaults>
</compile_context>

<pallas_src>
import functools

import jax
import jax.numpy as jnp
from jax.experimental import pallas as pl
from jax.experimental.pallas import tpu as pltpu

HIDDEN = 8
_EPS = 1e-5


def _round_up(x, m):
    return ((x + m - 1) // m) * m


def _mlpnet_kernel(x_ref, p_ref, o_ref, *, d_out_pad):
    """x_ref: [C, tile_b] (features x batch, batch on lanes), bf16 or f32.
    p_ref: packed f32 parameter slab [R, C] (see mlpnet_forward for layout).
    o_ref: [d_out_pad, tile_b] f32."""
    xt = x_ref[...].astype(jnp.float32)
    p = p_ref[...]

    h = HIDDEN
    r5 = 4 * h                    # rows where W5^T starts
    rb = r5 + d_out_pad           # rows where the bias block starts

    def dot(a, b):
        return jnp.dot(a, b, preferred_element_type=jnp.float32)

    # layer 1: Linear(input_dim -> 8) + ReLU   (BN1 is folded into layer 2)
    a = jnp.maximum(dot(p[0:h, :], xt) + p[rb:rb + h, 0:1], 0.0)
    # layers 2..4: (BN-folded) Linear(8 -> 8) + ReLU
    a = jnp.maximum(dot(p[h:2 * h, 0:h], a) + p[rb:rb + h, 1:2], 0.0)
    a = jnp.maximum(dot(p[2 * h:3 * h, 0:h], a) + p[rb:rb + h, 2:3], 0.0)
    a = jnp.maximum(dot(p[3 * h:4 * h, 0:h], a) + p[rb:rb + h, 3:4], 0.0)
    # output layer: (BN4-folded) Linear(8 -> d_out), rows padded to d_out_pad
    out = dot(p[r5:r5 + d_out_pad, 0:h], a) + p[rb:rb + d_out_pad, 4:5]
    o_ref[...] = out.astype(o_ref.dtype)


def mlpnet_reference(x, params):
    """Plain-JAX reference of the same forward (eval-mode BN, unfolded)."""
    h = x
    for i in range(1, 5):
        h = h @ params[f"w{i}"] + params[f"b{i}"]
        h = jnp.maximum(h, 0.0)
        h = (h - params[f"bn{i}_mean"]) / jnp.sqrt(params[f"bn{i}_var"] + _EPS)
        h = h * params[f"bn{i}_gamma"] + params[f"bn{i}_beta"]
    return h @ params["w5"] + params["b5"]


@functools.partial(
    jax.jit,
    static_argnames=("input_dma_dtype", "max_tile_b", "vmem_budget_bytes",
                     "min_pallas_batch"))
def mlpnet_forward(x, params, *, input_dma_dtype=jnp.bfloat16,
                   max_tile_b=8192, vmem_budget_bytes=12 * 1024 * 1024,
                   min_pallas_batch=256):
    """params: dict with keys w1..w5 ([in,out]), b1..b5, bn{1..4}_{gamma,beta,mean,var}."""
    B, input_dim = x.shape
    d_out = params["w5"].shape[1]

    # Small-batch fallback: at tiny B the fused kernel is pure fixed cost
    # (launch + param DMA + layout ops); run the same eval-mode math in XLA.
    if B < min_pallas_batch:
        return mlpnet_reference(x, params)

    d_out_pad = _round_up(d_out, HIDDEN)
    C = max(input_dim, HIDDEN)

    # ---- fold eval-mode BN_i into Linear_{i+1} (one-time, plain JAX) ----
    def bn_affine(i):
        g = params[f"bn{i}_gamma"]
        b = params[f"bn{i}_beta"]
        m = params[f"bn{i}_mean"]
        v = params[f"bn{i}_var"]
        s = g / jnp.sqrt(v + _EPS)
        t = b - m * s
        return s, t

    s1, t1 = bn_affine(1)
    s2, t2 = bn_affine(2)
    s3, t3 = bn_affine(3)
    s4, t4 = bn_affine(4)

    def fold_into(w, b, s, t):      # w: [in, out]; BN applied to this layer's INPUT
        return w * s[:, None], b + t @ w

    w2f, b2f = fold_into(params["w2"], params["b2"], s1, t1)
    w3f, b3f = fold_into(params["w3"], params["b3"], s2, t2)
    w4f, b4f = fold_into(params["w4"], params["b4"], s3, t3)
    w5f, b5f = fold_into(params["w5"], params["b5"], s4, t4)

    # ---- pack everything into one [R, C] f32 slab (8-row-aligned sections) ----
    # rows 0:8       W1^T        (cols 0:input_dim)
    # rows 8:32      W2^T..W4^T  (cols 0:8)
    # rows 32:32+dp  W5^T padded (cols 0:8)
    # rows rb:rb+dp  biases as columns: col0=b1 col1=b2 col2=b3 col3=b4 col4=b5
    r5 = 4 * HIDDEN
    rb = r5 + d_out_pad
    R = rb + d_out_pad
    slab = jnp.zeros((R, C), jnp.float32)
    slab = slab.at[0:HIDDEN, 0:input_dim].set(params["w1"].T.astype(jnp.float32))
    slab = slab.at[HIDDEN:2 * HIDDEN, 0:HIDDEN].set(w2f.T)
    slab = slab.at[2 * HIDDEN:3 * HIDDEN, 0:HIDDEN].set(w3f.T)
    slab = slab.at[3 * HIDDEN:4 * HIDDEN, 0:HIDDEN].set(w4f.T)
    slab = slab.at[r5:r5 + d_out, 0:HIDDEN].set(w5f.T)
    slab = slab.at[rb:rb + HIDDEN, 0].set(params["b1"].astype(jnp.float32))
    slab = slab.at[rb:rb + HIDDEN, 1].set(b2f)
    slab = slab.at[rb:rb + HIDDEN, 2].set(b3f)
    slab = slab.at[rb:rb + HIDDEN, 3].set(b4f)
    slab = slab.at[rb:rb + d_out, 4].set(b5f)

    # ---- lane-tile selection from a per-step VMEM budget ----
    # per batch-lane bytes: double-buffered input + output blocks plus the
    # in-kernel f32 copies of the activation / output tiles.
    in_bytes = jnp.dtype(input_dma_dtype).itemsize
    per_lane = (2 * C * in_bytes + 2 * d_out_pad * 4
                + (C + d_out_pad + 2 * HIDDEN) * 4)
    cap = max(128, (vmem_budget_bytes // per_lane) // 128 * 128)
    B128 = _round_up(B, 128)
    tile_b = min(max_tile_b, cap, B128)
    if B128 >= 256:
        # keep >= 2 grid steps so v7x can shard the "parallel" batch axis
        # across its two TensorCores (no cost on 1-TC v5e/v6e).
        tile_b = min(tile_b, max(128, (B128 // 2) // 128 * 128))
    tile_b = max(128, (tile_b // 128) * 128)
    B_pad = _round_up(B128, tile_b)      # pad UP to the tile; waste <= 1 tile
    grid = (B_pad // tile_b,)

    # ---- batch-on-lanes input: one fused (under jit) transpose+pad+cast op,
    #      shipped through the DMA in bf16 by default ----
    xt = jnp.zeros((C, B_pad), input_dma_dtype)
    xt = xt.at[0:input_dim, 0:B].set(x.T.astype(input_dma_dtype))

    kernel = functools.partial(_mlpnet_kernel, d_out_pad=d_out_pad)
    out = pl.pallas_call(
        kernel,
        out_shape=jax.ShapeDtypeStruct((d_out_pad, B_pad), jnp.float32),
        grid_spec=pltpu.PrefetchScalarGridSpec(
            num_scalar_prefetch=0,
            grid=grid,
            in_specs=[
                pl.BlockSpec((C, tile_b), lambda i: (0, i)),   # activations, batch on lanes
                pl.BlockSpec((R, C), lambda i: (0, 0)),        # param slab (constant index -> 1 DMA)
            ],
            out_specs=pl.BlockSpec((d_out_pad, tile_b), lambda i: (0, i)),
        ),
        compiler_params=pltpu.CompilerParams(
            dimension_semantics=("parallel",),
            vmem_limit_bytes=32 * 1024 * 1024,
        ),
    )(xt, slab)

    return out[0:d_out, 0:B].T


def init_params(key, input_dim, output_dim, hidden=HIDDEN):
    """Deterministic synthetic parameter init (PyTorch Linear is [out,in];
    we store weights as [in,out]; the packer transposes)."""
    ks = jax.random.split(key, 32)
    k_iter = iter(range(32))
    p = {}
    dims = [(input_dim, hidden), (hidden, hidden), (hidden, hidden),
            (hidden, hidden), (hidden, output_dim)]
    for li, (din, dout) in enumerate(dims, start=1):
        bound = 1.0 / jnp.sqrt(din)
        p[f"w{li}"] = jax.random.uniform(
            ks[next(k_iter)], (din, dout), jnp.float32, -bound, bound)
        p[f"b{li}"] = jax.random.uniform(
            ks[next(k_iter)], (dout,), jnp.float32, -bound, bound)
    for bi in range(1, 5):
        p[f"bn{bi}_gamma"] = 1.0 + 0.1 * jax.random.normal(
            ks[next(k_iter)], (hidden,), jnp.float32)
        p[f"bn{bi}_beta"] = 0.1 * jax.random.normal(
            ks[next(k_iter)], (hidden,), jnp.float32)
        p[f"bn{bi}_mean"] = 0.05 * jax.random.normal(
            ks[next(k_iter)], (hidden,), jnp.float32)
        p[f"bn{bi}_var"] = 1.0 + 0.1 * jnp.abs(
            jax.random.normal(ks[next(k_iter)], (hidden,), jnp.float32))
    return p


if __name__ == "__main__":
    key = jax.random.PRNGKey(0)
    k_x, k_p = jax.random.split(key)

    INPUT_DIM, OUTPUT_DIM = 16, 10   # TrojanNet-style MLP dims
    params = init_params(k_p, INPUT_DIM, OUTPUT_DIM)

    # 1) Pallas path, bf16 input DMA (default), ragged batch (exercises pad-to-tile).
    B1 = 300
    x1 = jax.random.normal(jax.random.fold_in(k_x, 1), (B1, INPUT_DIM), jnp.float32)
    out1 = jax.block_until_ready(mlpnet_forward(x1, params))
    assert out1.shape == (B1, OUTPUT_DIM)
    x1_q = x1.astype(jnp.bfloat16).astype(jnp.float32)   # only diff is input quantization
    assert jnp.allclose(out1, mlpnet_reference(x1_q, params), atol=1e-4, rtol=1e-4), \
        "mismatch vs bf16-input reference"
    assert jnp.allclose(out1, mlpnet_reference(x1, params), atol=1e-1, rtol=1e-1), \
        "mismatch vs f32 reference beyond bf16 quantization"

    # 2) Pallas path, f32 input DMA (bit-exact inputs), 2 grid steps (v7x megacore).
    B2 = 256
    x2 = jax.random.normal(jax.random.fold_in(k_x, 2), (B2, INPUT_DIM), jnp.float32)
    out2 = jax.block_until_ready(
        mlpnet_forward(x2, params, input_dma_dtype=jnp.float32))
    assert out2.shape == (B2, OUTPUT_DIM)
    assert jnp.allclose(out2, mlpnet_reference(x2, params), atol=1e-4, rtol=1e-4), \
        "mismatch vs reference (f32 path)"

    # 3) tiny batch -> XLA fallback (kernel launch not worth it at this size).
    B3 = 16
    x3 = jax.random.normal(jax.random.fold_in(k_x, 3), (B3, INPUT_DIM), jnp.float32)
    out3 = jax.block_until_ready(mlpnet_forward(x3, params))
    assert out3.shape == (B3, OUTPUT_DIM)
    assert jnp.allclose(out3, mlpnet_reference(x3, params), atol=1e-4, rtol=1e-4), \
        "mismatch vs reference (fallback path)"

    print("KERNEL_OK")
</pallas_src>

<mosaic_0001>
module attributes {stable_mosaic.version = 11 : i64} {
  func.func @_mlpnet_kernel(%arg0: i32, %arg1: memref<16x128xbf16, #tpu.memory_space<vmem>>, %arg2: memref<64x16xf32, #tpu.memory_space<vmem>>, %arg3: memref<16x128xf32, #tpu.memory_space<vmem>>) attributes {dimension_semantics = [#tpu.dimension_semantics<parallel>], iteration_bounds = array<i64: 3>, scalar_prefetch = 0 : i64, scratch_operands = 0 : i64, tpu.core_type = #tpu.core_type<tc>, window_params = [{transform_indices = @transform_0, window_bounds = array<i64: 16, 128>}, {pipeline_mode = #tpu.pipeline_mode<synchronous>, transform_indices = @transform_1, window_bounds = array<i64: 64, 16>}, {transform_indices = @transform_2, window_bounds = array<i64: 16, 128>}]} {
    %c0 = arith.constant 0 : index
    %c0_0 = arith.constant 0 : index
    %0 = vector.load %arg1[%c0, %c0_0] : memref<16x128xbf16, #tpu.memory_space<vmem>>, vector<16x128xbf16>
    %1 = arith.extf %0 : vector<16x128xbf16> to vector<16x128xf32>
    %c0_1 = arith.constant 0 : index
    %c0_2 = arith.constant 0 : index
    %2 = vector.load %arg2[%c0_1, %c0_2] : memref<64x16xf32, #tpu.memory_space<vmem>>, vector<64x16xf32>
    %3 = vector.extract_strided_slice %2 {offsets = [0, 0], sizes = [8, 16], strides = [1, 1]} : vector<64x16xf32> to vector<8x16xf32>
    %cst = arith.constant dense<0.000000e+00> : vector<8x128xf32>
    %4 = tpu.matmul %3, %1, %cst {dimension_numbers = #tpu.dot_dimension_numbers<[1], [0], [0], [1], [0, 0, 1, 1], [], []>} : vector<8x16xf32>, vector<16x128xf32>, vector<8x128xf32> -> vector<8x128xf32>
    %5 = vector.extract_strided_slice %2 {offsets = [48, 0], sizes = [8, 1], strides = [1, 1]} : vector<64x16xf32> to vector<8x1xf32>
    %6 = vector.broadcast %5 : vector<8x1xf32> to vector<8x128xf32>
    %7 = arith.addf %4, %6 : vector<8x128xf32>
    %cst_3 = arith.constant 0.000000e+00 : f32
    %8 = vector.broadcast %cst_3 : f32 to vector<8x128xf32>
    %9 = arith.maximumf %7, %8 : vector<8x128xf32>
    %10 = vector.extract_strided_slice %2 {offsets = [8, 0], sizes = [8, 8], strides = [1, 1]} : vector<64x16xf32> to vector<8x8xf32>
    %cst_4 = arith.constant dense<0.000000e+00> : vector<8x128xf32>
    %11 = tpu.matmul %10, %9, %cst_4 {dimension_numbers = #tpu.dot_dimension_numbers<[1], [0], [0], [1], [0, 0, 1, 1], [], []>} : vector<8x8xf32>, vector<8x128xf32>, vector<8x128xf32> -> vector<8x128xf32>
    %12 = vector.extract_strided_slice %2 {offsets = [48, 1], sizes = [8, 1], strides = [1, 1]} : vector<64x16xf32> to vector<8x1xf32>
    %13 = vector.broadcast %12 : vector<8x1xf32> to vector<8x128xf32>
    %14 = arith.addf %11, %13 : vector<8x128xf32>
    %cst_5 = arith.constant 0.000000e+00 : f32
    %15 = vector.broadcast %cst_5 : f32 to vector<8x128xf32>
    %16 = arith.maximumf %14, %15 : vector<8x128xf32>
    %17 = vector.extract_strided_slice %2 {offsets = [16, 0], sizes = [8, 8], strides = [1, 1]} : vector<64x16xf32> to vector<8x8xf32>
    %cst_6 = arith.constant dense<0.000000e+00> : vector<8x128xf32>
    %18 = tpu.matmul %17, %16, %cst_6 {dimension_numbers = #tpu.dot_dimension_numbers<[1], [0], [0], [1], [0, 0, 1, 1], [], []>} : vector<8x8xf32>, vector<8x128xf32>, vector<8x128xf32> -> vector<8x128xf32>
    %19 = vector.extract_strided_slice %2 {offsets = [48, 2], sizes = [8, 1], strides = [1, 1]} : vector<64x16xf32> to vector<8x1xf32>
    %20 = vector.broadcast %19 : vector<8x1xf32> to vector<8x128xf32>
    %21 = arith.addf %18, %20 : vector<8x128xf32>
    %cst_7 = arith.constant 0.000000e+00 : f32
    %22 = vector.broadcast %cst_7 : f32 to vector<8x128xf32>
    %23 = arith.maximumf %21, %22 : vector<8x128xf32>
    %24 = vector.extract_strided_slice %2 {offsets = [24, 0], sizes = [8, 8], strides = [1, 1]} : vector<64x16xf32> to vector<8x8xf32>
    %cst_8 = arith.constant dense<0.000000e+00> : vector<8x128xf32>
    %25 = tpu.matmul %24, %23, %cst_8 {dimension_numbers = #tpu.dot_dimension_numbers<[1], [0], [0], [1], [0, 0, 1, 1], [], []>} : vector<8x8xf32>, vector<8x128xf32>, vector<8x128xf32> -> vector<8x128xf32>
    %26 = vector.extract_strided_slice %2 {offsets = [48, 3], sizes = [8, 1], strides = [1, 1]} : vector<64x16xf32> to vector<8x1xf32>
    %27 = vector.broadcast %26 : vector<8x1xf32> to vector<8x128xf32>
    %28 = arith.addf %25, %27 : vector<8x128xf32>
    %cst_9 = arith.constant 0.000000e+00 : f32
    %29 = vector.broadcast %cst_9 : f32 to vector<8x128xf32>
    %30 = arith.maximumf %28, %29 : vector<8x128xf32>
    %31 = vector.extract_strided_slice %2 {offsets = [32, 0], sizes = [16, 8], strides = [1, 1]} : vector<64x16xf32> to vector<16x8xf32>
    %cst_10 = arith.constant dense<0.000000e+00> : vector<16x128xf32>
    %32 = tpu.matmul %31, %30, %cst_10 {dimension_numbers = #tpu.dot_dimension_numbers<[1], [0], [0], [1], [0, 0, 1, 1], [], []>} : vector<16x8xf32>, vector<8x128xf32>, vector<16x128xf32> -> vector<16x128xf32>
    %33 = vector.extract_strided_slice %2 {offsets = [48, 4], sizes = [16, 1], strides = [1, 1]} : vector<64x16xf32> to vector<16x1xf32>
    %34 = vector.broadcast %33 : vector<16x1xf32> to vector<16x128xf32>
    %35 = arith.addf %32, %34 : vector<16x128xf32>
    %c0_11 = arith.constant 0 : index
    %c0_12 = arith.constant 0 : index
    %36 = vector.load %arg3[%c0_11, %c0_12] : memref<16x128xf32, #tpu.memory_space<vmem>>, vector<16x128xf32>
    tpu.vector_store %arg3[%c0_11, %c0_12], %35 {strides = array<i32>} : memref<16x128xf32, #tpu.memory_space<vmem>>, vector<16x128xf32>,
    return
  }
  func.func @transform_0(%arg0: i32) -> (i32, i32) {
    %c0_i32 = arith.constant 0 : i32
    %c0_i32_0 = arith.constant 0 : i32
    return %c0_i32, %arg0 : i32, i32
  }
  func.func @transform_1(%arg0: i32) -> (i32, i32) {
    %c0_i32 = arith.constant 0 : i32
    %c0_i32_0 = arith.constant 0 : i32
    %c0_i32_1 = arith.constant 0 : i32
    return %c0_i32, %c0_i32_0 : i32, i32
  }
  func.func @transform_2(%arg0: i32) -> (i32, i32) {
    %c0_i32 = arith.constant 0 : i32
    %c0_i32_0 = arith.constant 0 : i32
    return %c0_i32, %arg0 : i32, i32
  }
}

</mosaic_0001>

<bundles_post_ra>
// kernel: mlpnet_forward.1
= control target key start
LH: loop header
LB: loop body
LE: loop exit
PB: predicated region body
PF: predicated region fallthrough
CT: control target
= control target key end

     0   :  { %s556_s9 = smov 0   ;;  %s558_s10 = smov 0   ;;  %s649_s0 = inlined_call_operand.vmem [shape: bf16[16,384], index: 0, kind: input, shape index: {}]   ;;  %s650_s1 = inlined_call_operand.vmem [shape: f32[64,16], index: 1, kind: input, shape index: {}]   ;;  %s651_s2 = inlined_call_operand.vmem [shape: f32[16,384], index: 2, kind: output, shape index: {}]  }
   0x1   :  { %s560_s11 = smov 0  }
   0x2 LB: > { %s454_s12 = sadd.s32 4294967295, %s534_s11   ;;  %s573_s13 = sadd.s32 1, %s534_s11   ;;  %s534_s11 = sphi %s560_s11, %s655_s11   ;;  %s530_s10 = sphi %s558_s10, %s654_s10   ;;  %s526_s9 = sphi %s556_s9, %s653_s9  }
   0x3   : > { %s16_s14 = ssub.s32 %s534_s11, %s573_s13  ;;  %s19_s15 = sadd.s32 1, %s530_s10 }
   0x4   : > { %p17_p0 = scmp.eq.s32.totalorder %s16_s14, 0  ;;  %p26_p1 = scmp.ne.s32.totalorder %s530_s10, %s526_s9 }
   0x5   : > { %p27_p2 = scmp.eq.s32.totalorder %s534_s11, 0  ;;  %p77_p3 = scmp.eq.s32.totalorder %s454_s12, 2 }
   0x6   : > { %s584_s16 = scalar_select %p17_p0, %s530_s10, %s19_s15  }
   0x7   : > { %p28_p4 = por %p27_p2, %p26_p1  ;;  %p586_p5 = por %p77_p3, %p26_p1 }
   0x8   : > { %p457_p6 = scmp.ge.s32.totalorder %s534_s11, 3 }
   0xa   : > { %102 = sbr.rel (%p457_p6) target bundleno = 21 (0x15), region = 20 }
   0xf   : > { %105 = sbr.rel (!%p28_p4) target bundleno = 21 (0x15), region = 24  ;;  %s107_s18 = sand.u32 (%p28_p4), 1, %s530_s10  }
  0x10   : > { %s459_s19 = sshll.u32 (%p28_p4), %s534_s11, 2  ;;  %s458_s20 = sshll.u32 (%p28_p4), %s107_s18, 3 }
  0x11   : > { %s111_s23 = scalar_lea.vmem (%p28_p4), %s649_s0, %s459_s19  ;;  %s109_s24 = scalar_lea.vmem (%p28_p4), [#allocation2], %s458_s20 }
  0x12   : > { %v128_v0 = vld [vmem:[%s111_s23] sm:$0xf] (%p28_p4)  ;;  %v130_v1 = vld [vmem:[%s111_s23 + $0xc] sm:$0xf] (%p28_p4) }
  0x13   : > { %129 = vst [vmem:[%s109_s24] sm:$0xf] (%p28_p4), %v128_v0 }
  0x14   : > { %131 = vst [vmem:[%s109_s24 + $0x4] sm:$0xf] %v130_v1 }
  0x15 PF: > { %p460_p7 = scmp.ge.s32.totalorder %s534_s11, 1  ;;  %p158_p8 = scmp.lt.s32.totalorder %s534_s11, 4 }
  0x17   : > { %p159_p9 = pnand %p460_p7, %p158_p8 }
  0x18   : > { %s165_s25 = sand.u32 (!%p159_p9), 1, %s526_s9  }
  0x19   : > { %162 = sbr.rel (%p159_p9) target bundleno = 723 (0x2d3), region = 65  ;;  %s461_s28 = sshll.u32 (!%p159_p9), %s165_s25, 3 }
  0x1a   : > { %s167_s29 = scalar_lea.vmem (!%p159_p9), [#allocation2], %s461_s28  ;;  %s462_s23 = sshll.u32 (!%p159_p9), %s165_s25, 4 }
  0x1b   : > { %s184_s24 = scalar_lea.vmem (!%p159_p9), [#allocation3], %s462_s23 }
  0x1e   : > { %v195_v2 = vld [vmem:[%s650_s1 + $0x30] sm:$0xff]  ;;  %v536_v3 = vmov 0   ;;  %v474_v4 = vld [vmem:[%s167_s29] sm:$0xff]   ;;  %vm202_vm0 = vcmask 130048   ;;  %v537_v8 = vmov 1   ;;  %vm231_vm1 = vcmask 64512  }
  0x1f   : > { %506 = vset.pattern.permute.xlu0 %v536_v3  ;;  %v476_v5 = vunpack.c.h.bf16 %v474_v4  ;;  %v475_v6 = vunpack.c.l.bf16 %v474_v4  ;;  %v189_v7 = vld [vmem:[%s650_s1] sm:$0xff]  ;;  %v190_v13 = vld [vmem:[%s650_s1 + $0x8] sm:$0xff]  ;;  %v538_v14 = vmov 2   ;;  %v191_v19 = vld [vmem:[%s650_s1 + $0x10] sm:$0xff]  ;;  %v539_v20 = vmov 3   ;;  %s470_s26 = sshll.u32 (%p586_p5), %s454_s12, 3 }
  0x20   : > { %199 = vperm.xlu0 %506, %v195_v2   ;;  %508 = vset.pattern.permute.xlu1 %v538_v14  ;;  %v192_v25 = vld [vmem:[%s650_s1 + $0x18] sm:$0xff]  ;;  %v540_v26 = vmov 4   ;;  %v193_v32 = vld [vmem:[%s650_s1 + $0x20] sm:$0xff]  ;;  %v194_v33 = vld [vmem:[%s650_s1 + $0x28] sm:$0xff]  ;;  %s360_s25 = scalar_lea.vmem (%p586_p5), %s651_s2, %s470_s26 }
  0x21   : > { %220 = vmatpush.msra.mxu0 %v476_v5  ;;  %257 = vperm.xlu1 %508, %v195_v2   ;;  %v196_v27 = vld [vmem:[%s650_s1 + $0x38] sm:$0xff] }
  0x22   : > { %510 = vset.pattern.permute.xlu2 %v540_v26 }
  0x23   : > { %221 = vmatpush.msra.mxu0 %v475_v6  ;;  %313 = vperm.xlu2 %510, %v195_v2  }
  0x24   : > { %463 = vmatmul.msk.f32.vlgmr.msra.gmra.mxu0 %vm202_vm0, %v189_v7 }
  0x28   : > { %507 = vset.pattern.permute.xlu0 %v537_v8 }
  0x29   : > { %228 = vperm.xlu0 %507, %v195_v2   ;;  %509 = vset.pattern.permute.xlu1 %v539_v20 }
  0x2a   : > { %285 = vperm.xlu1 %509, %v195_v2  }
  0x2b   : > { %318 = vperm.xlu2 %510, %v196_v27  }
  0x31   : > { %511 = vset.pattern.permute.xlu0 %v540_v26 }
  0x7d   : > { %v314_v34 = vpop.permute.xlu2 %313 }
  0x85   : > { %v319_v37 = vpop.permute.xlu2 %318 }
  0x92   : > { %v200_v9 = vpop.permute.xlu0 %199 }
  0x93   : > { %v258_v21 = vpop.permute.xlu1 %257 }
  0x9b   : > { %v229_v15 = vpop.permute.xlu0 %228 }
  0x9c   : > { %v286_v28 = vpop.permute.xlu1 %285 }
  0xa1   : > { %v223_v10 = vpop.f32.mrf.mxu0 }
  0xa2   : > { %v224_v11 = vadd.f32 %v223_v10, %v200_v9 }
  0xa4   : > { %v226_v12 = vmax.f32 %v224_v11, 0.0 }
  0xa6   : > { %250 = vmatpush.msra.mxu2 %v226_v12 }
  0xa7   : > { %464 = vmatmul.msk.f32.vlgmr.msra.gmra.mxu2 %vm231_vm1, %v190_v13 }
 0x12a   : > { %v252_v16 = vpop.f32.mrf.mxu2 }
 0x12b   : > { %v253_v17 = vadd.f32 %v252_v16, %v229_v15 }
 0x12d   : > { %v255_v18 = vmax.f32 %v253_v17, 0.0 }
 0x12f   : > { %278 = vmatpush.msrb.mxu2 %v255_v18 }
 0x130   : > { %465 = vmatmul.msk.f32.vlgmr.msrb.gmra.mxu2 %vm231_vm1, %v191_v19 }
 0x1b3   : > { %v280_v22 = vpop.f32.mrf.mxu2 }
 0x1b4   : > { %v281_v23 = vadd.f32 %v280_v22, %v258_v21 }
 0x1b6   : > { %v283_v24 = vmax.f32 %v281_v23, 0.0 }
 0x1b8   : > { %306 = vmatpush.msra.mxu3 %v283_v24 }
 0x1b9   : > { %466 = vmatmul.msk.f32.vlgmr.msra.gmra.mxu3 %vm231_vm1, %v192_v25 }
 0x23c   : > { %v308_v29 = vpop.f32.mrf.mxu3 }
 0x23d   : > { %v309_v30 = vadd.f32 %v308_v29, %v286_v28 }
 0x23f   : > { %v311_v31 = vmax.f32 %v309_v30, 0.0 }
 0x241   : > { %342 = vmatpush.msra.mxu1 %v311_v31 }
 0x242   : > { %467 = vmatmul.msk.f32.vlgmr.msra.gmra.mxu1 %vm231_vm1, %v193_v32 }
 0x24a   : > { %468 = vmatmul.msk.f32.gmra.mxu1 %vm231_vm1, %v194_v33 }
 0x2bf   : > { %v344_v35 = vpop.f32.mrf.mxu1 }
 0x2c0   : > { %v345_v36 = vadd.f32 %v344_v35, %v314_v34 }
 0x2c2   : > { %350 = vst [vmem:[%s184_s24] sm:$0xff] %v345_v36 }
 0x2c6   : > { %358 = sbr.rel (!%p586_p5) target bundleno = 723 (0x2d3), region = 73 }
 0x2c7   : > { %v347_v38 = vpop.f32.mrf.mxu1 }
 0x2c8   : > { %v348_v39 = vadd.f32 %v347_v38, %v319_v37 }
 0x2c9   : > { %v391_v40 = vld [vmem:[%s184_s24] sm:$0xff] (%p586_p5) }
 0x2ca   : > { %351 = vst [vmem:[%s184_s24 + $0x8] sm:$0xff] %v348_v39 }
 0x2cb   : > { %392 = vst [vmem:[%s360_s25] sm:$0xff] %v391_v40 }
 0x2d1   : > { %v393_v41 = vld [vmem:[%s184_s24 + $0x8] sm:$0xff] }
 0x2d2   : > { %394 = vst [vmem:[%s360_s25 + $0x18] sm:$0xff] %v393_v41 }
 0x2d3 PF: > { %p9_p10 = scmp.ge.s32.totalorder %s573_s13, 5   ;;  %s653_s9 = smov %s530_s10 }
 0x2d4   : > { %s654_s10 = smov %s584_s16  ;;  %s655_s11 = smov %s573_s13 }
 0x2d5   :  { %11 = sbr.rel (!%p9_p10) target bundleno = 2 (0x2), region = 142 }

</bundles_post_ra>
